<compile_context>
chip_gen: v7x
topology: tpu7x:2x2x1
jax: 0.10.0
libtpu: 0.0.40
codegen_flags: <defaults>
</compile_context>

<pallas_src>
import functools

import jax
import jax.numpy as jnp
import numpy as np
from jax.experimental import pallas as pl
from jax.experimental.pallas import tpu as pltpu

LANE = 128
SUBLANE = 8
MAX_BATCH_TILE = 2048            # rows per grid step
VMEM_LIMIT_BYTES = 32 * 1024 * 1024


def _cdiv(a, b):
    return -(-a // b)


def _round_up(x, m):
    return _cdiv(x, m) * m


def _batch_tile(B):
    """Pick the batch tile: >=2 tiles when B allows (v7x megacore), else 1 big tile."""
    return min(MAX_BATCH_TILE, max(SUBLANE, _round_up(_cdiv(B, 2), SUBLANE)))


# ----------------------------------------------------------------------------
# Kernels
# ----------------------------------------------------------------------------
def _table_lookup_kernel(idx_ref, table_ref, o_ref):
    """o[r, :] = table[idx[r], :] -- exact gather via unrolled VPU selects."""
    idx = idx_ref[...]                                     # (TB, 1) int32
    acc = jnp.zeros(o_ref.shape, jnp.float32)
    for k in range(table_ref.shape[0]):                    # static unroll (n_obs rows)
        row = table_ref[k:k + 1, :]                        # (1, d_out_p) f32, static slice
        acc = acc + jnp.where(idx == k, row, 0.0)          # (TB,1) cond x (1,D) broadcast
    o_ref[...] = acc


def _mlp_kernel(x_ref, w1_ref, b1_ref, w2_ref, b2_ref, w3_ref, b3_ref, o_ref):
    """One batch tile of relu(relu(obs*w1 + b1) @ w2 + b2) @ w3 + b3.

    obs_dim == 1 -> layer 1 is a VPU broadcast multiply (no MXU pass).
    Layers 2+3 are fused over H2 chunks so the full f32 h2 never hits VMEM;
    dot operands are bf16, accumulation is f32; bias + ReLU stay f32 (VPU).
    """
    x = x_ref[...]                                                    # (TB, 1) f32
    h1 = jnp.maximum(x * w1_ref[...] + b1_ref[...], 0.0)              # (TB, H1) f32
    h1_b = h1.astype(w2_ref.dtype)                                    # bf16 for MXU

    H2 = w2_ref.shape[1]
    chunk = 256 if H2 % 256 == 0 else 128
    acc = jnp.zeros(o_ref.shape, jnp.float32)
    for c in range(0, H2, chunk):                                     # static unroll
        h2_c = jnp.dot(h1_b, w2_ref[:, c:c + chunk],
                       preferred_element_type=jnp.float32) + b2_ref[:, c:c + chunk]
        h2_c = jnp.maximum(h2_c, 0.0).astype(w3_ref.dtype)            # bf16 into MXU
        acc = acc + jnp.dot(h2_c, w3_ref[c:c + chunk, :],
                            preferred_element_type=jnp.float32)
    o_ref[...] = acc + b3_ref[...]


# ----------------------------------------------------------------------------
# References (pure JAX) -- also used to build the discrete logits table.
# ----------------------------------------------------------------------------
def reference_forward_f32(obs, params):
    (w1, b1), (w2, b2), (w3, b3) = params
    x = obs.astype(jnp.float32)
    x = jnp.maximum(x @ w1 + b1, 0.0)
    x = jnp.maximum(x @ w2 + b2, 0.0)
    return x @ w3 + b3


def reference_forward_bf16w(obs, params):
    """Same math at the MLP kernel's precision (bf16 dot operands, f32 accumulate)."""
    (w1, b1), (w2, b2), (w3, b3) = params
    x = obs.astype(jnp.float32)
    h1 = jnp.maximum(x @ w1 + b1, 0.0)
    h2 = jnp.maximum(
        jnp.dot(h1.astype(jnp.bfloat16), w2.astype(jnp.bfloat16),
                preferred_element_type=jnp.float32) + b2, 0.0)
    return jnp.dot(h2.astype(jnp.bfloat16), w3.astype(jnp.bfloat16),
                   preferred_element_type=jnp.float32) + b3


# ----------------------------------------------------------------------------
# One-time parameter preparation
# ----------------------------------------------------------------------------
def prepare_params(params, *, discrete_n=None, weight_dtype=jnp.bfloat16):
    """One-time (not per-call) padding / dtype conversion / table precompute.

    Weights are stored as (in_features, out_features) — the transpose of
    PyTorch nn.Linear's (out, in) — so kernels compute y = x @ W + b.  Hidden
    and output feature dims are zero-padded to lane multiples (128); zero
    padding is a mathematical no-op (ReLU(0) = 0, padded cols sliced off).

    If discrete_n is given (Discrete ob_space), also precomputes the exact f32
    logits table hnet(k) for k in {0..discrete_n-1}, padded to (>=8, 128).
    Returns (mlp_prepared, table_or_None, d_out).
    """
    (w1, b1), (w2, b2), (w3, b3) = params
    d_in, h1 = w1.shape
    _, h2 = w2.shape
    _, d_out = w3.shape
    assert d_in == 1, "kernel specialises the Discrete ob_space case (obs_dim == 1)"
    # TODO(synk): Tuple/Box ob_space (obs_dim > 1) would need a padded first matmul.

    h1p = _round_up(max(h1, LANE), LANE)
    h2p = _round_up(max(h2, LANE), LANE)
    d_out_p = _round_up(max(d_out, LANE), LANE)

    def pad2(a, rows, cols):
        a = jnp.asarray(a, jnp.float32)
        return jnp.zeros((rows, cols), jnp.float32).at[:a.shape[0], :a.shape[1]].set(a)

    mlp = (
        pad2(w1.reshape(1, h1), 1, h1p),              # tiny, kept f32 (VPU layer)
        pad2(b1.reshape(1, h1), 1, h1p),
        pad2(w2, h1p, h2p).astype(weight_dtype),      # bf16: halves weight DMA
        pad2(b2.reshape(1, h2), 1, h2p),
        pad2(w3, h2p, d_out_p).astype(weight_dtype),
        pad2(b3.reshape(1, d_out), 1, d_out_p),
    )

    table = None
    if discrete_n is not None:
        all_obs = jnp.arange(discrete_n, dtype=jnp.float32)[:, None]   # (n, 1)
        tbl = reference_forward_f32(all_obs, params)                   # (n, d_out) f32
        rows_p = _round_up(max(discrete_n, SUBLANE), SUBLANE)
        table = pad2(tbl, rows_p, d_out_p)

    return mlp, table, d_out


# ----------------------------------------------------------------------------
# Forward wrappers
# ----------------------------------------------------------------------------
@functools.partial(jax.jit, static_argnums=(2,))
def dbn_forward_discrete(obs, table, d_out):
    """Fast path for Discrete ob_space: gather precomputed logits rows.

    obs: (B, 1) or (1,), integer-valued (int or float).  Returns (B, d_out) f32.
    """
    if obs.ndim == 1:                       # single observation, as in torch forward
        obs = obs[None, :]
    B = obs.shape[0]
    idx = obs.astype(jnp.int32)             # integer-valued floats truncate exactly
    rows_p, d_out_p = table.shape

    TB = _batch_tile(B)
    n_tiles = _cdiv(B, TB)

    grid_spec = pltpu.PrefetchScalarGridSpec(
        num_scalar_prefetch=0,
        grid=(n_tiles,),
        in_specs=[
            pl.BlockSpec((TB, 1), lambda i: (i, 0)),             # obs index tile
            pl.BlockSpec((rows_p, d_out_p), lambda i: (0, 0)),   # table, VMEM-resident
        ],
        out_specs=pl.BlockSpec((TB, d_out_p), lambda i: (i, 0)),
    )

    out_p = pl.pallas_call(
        _table_lookup_kernel,
        out_shape=jax.ShapeDtypeStruct((B, d_out_p), jnp.float32),
        grid_spec=grid_spec,
        compiler_params=pltpu.CompilerParams(
            dimension_semantics=("parallel",),
            vmem_limit_bytes=VMEM_LIMIT_BYTES),
        cost_estimate=pl.CostEstimate(
            flops=2 * B * rows_p * d_out_p, transcendentals=0,
            bytes_accessed=B * 4 + rows_p * d_out_p * 4 + B * d_out_p * 4),
    )(idx, table)

    # Cheap column slice to the real logit count; large-batch consumers may keep
    # the padded 128-lane buffer instead of slicing eagerly.
    return out_p[:, :d_out]


@functools.partial(jax.jit, static_argnums=(2,))
def dbn_forward_mlp(obs, mlp, d_out):
    """General path (Box/Tuple ob_space or non-integer obs): padded MLP kernel.

    obs: (B, 1) or (1,) float-castable.  Returns (B, d_out) f32.
    """
    w1, b1, w2, b2, w3, b3 = mlp
    if obs.ndim == 1:
        obs = obs[None, :]
    B = obs.shape[0]
    H1 = w1.shape[1]
    H2 = w2.shape[1]
    d_out_p = w3.shape[1]

    x = obs.astype(jnp.float32)             # (B, 1); no wrapper-side row padding

    TB = _batch_tile(B)
    n_tiles = _cdiv(B, TB)

    const = lambda i: (0, 0)                # weights stay VMEM-resident across tiles
    grid_spec = pltpu.PrefetchScalarGridSpec(
        num_scalar_prefetch=0,
        grid=(n_tiles,),
        in_specs=[
            pl.BlockSpec((TB, 1), lambda i: (i, 0)),       # obs tile
            pl.BlockSpec((1, H1), const),                  # w1 row (f32)
            pl.BlockSpec((1, H1), const),                  # b1
            pl.BlockSpec((H1, H2), const),                 # w2 (bf16)
            pl.BlockSpec((1, H2), const),                  # b2
            pl.BlockSpec((H2, d_out_p), const),            # w3 (bf16)
            pl.BlockSpec((1, d_out_p), const),             # b3
        ],
        out_specs=pl.BlockSpec((TB, d_out_p), lambda i: (i, 0)),
    )

    flops = 2 * B * (H1 * H2 + H2 * d_out_p) + 2 * B * H1
    bytes_accessed = (
        B * 4
        + w1.size * 4 + b1.size * 4
        + w2.size * w2.dtype.itemsize + b2.size * 4
        + w3.size * w3.dtype.itemsize + b3.size * 4
        + B * d_out_p * 4
    )

    out_p = pl.pallas_call(
        _mlp_kernel,
        out_shape=jax.ShapeDtypeStruct((B, d_out_p), jnp.float32),
        grid_spec=grid_spec,
        compiler_params=pltpu.CompilerParams(
            dimension_semantics=("parallel",),
            vmem_limit_bytes=VMEM_LIMIT_BYTES),
        cost_estimate=pl.CostEstimate(
            flops=flops, transcendentals=0, bytes_accessed=bytes_accessed),
    )(x, w1, b1, w2, b2, w3, b3)

    return out_p[:, :d_out]


# ----------------------------------------------------------------------------
# Deterministic init mimicking PyTorch Linear default (uniform +/- 1/sqrt(fan_in)).
# Weights stored as (in_features, out_features) = transpose of nn.Linear.weight.
# ----------------------------------------------------------------------------
def init_params(key, obs_dim, layers, n_obs):
    dims = [obs_dim] + list(layers) + [n_obs]
    params = []
    for i in range(len(dims) - 1):
        key, kw, kb = jax.random.split(key, 3)
        fan_in, fan_out = dims[i], dims[i + 1]
        bound = 1.0 / np.sqrt(fan_in)
        w = jax.random.uniform(kw, (fan_in, fan_out), jnp.float32, -bound, bound)
        b = jax.random.uniform(kb, (fan_out,), jnp.float32, -bound, bound)
        params.append((w, b))
    return params


if __name__ == "__main__":
    # ob_space = Discrete(8) -> obs_dim = 1, n_obs = 8; default layers [128, 512]
    obs_dim = 1
    n_obs = 8
    layers = [128, 512]
    n_batch = 16

    key = jax.random.PRNGKey(0)
    key, k_obs = jax.random.split(key)
    params = init_params(key, obs_dim, layers, n_obs)

    # One-time preparation: padding + bf16 cast + discrete logits table.
    mlp_prepared, table, d_out = prepare_params(params, discrete_n=n_obs)
    mlp_prepared = jax.block_until_ready(mlp_prepared)
    table = jax.block_until_ready(table)

    # Discrete observations, cast to float as DBNPolicy.forward does.
    obs = jax.random.randint(k_obs, (n_batch, obs_dim), 0, n_obs).astype(jnp.float32)

    # Fast Discrete(8) path: whole network collapses to a precomputed 8-row table.
    out_tab = jax.block_until_ready(dbn_forward_discrete(obs, table, d_out))
    assert out_tab.shape == (n_batch, n_obs), out_tab.shape

    # General MLP kernel path (kept for non-discrete / non-integer obs).
    out_mlp = jax.block_until_ready(dbn_forward_mlp(obs, mlp_prepared, d_out))
    assert out_mlp.shape == (n_batch, n_obs), out_mlp.shape

    ref_f32 = reference_forward_f32(obs, params)
    ref_bf16 = reference_forward_bf16w(obs, params)

    # Table path matches the pure-f32 PyTorch-equivalent forward (exact gather).
    np.testing.assert_allclose(np.asarray(out_tab), np.asarray(ref_f32),
                               rtol=1e-4, atol=1e-4)
    # MLP path matches the bf16-weight reference tightly ...
    np.testing.assert_allclose(np.asarray(out_mlp), np.asarray(ref_bf16),
                               rtol=2e-3, atol=2e-3)
    # ... and the pure-f32 forward loosely.
    np.testing.assert_allclose(np.asarray(out_mlp), np.asarray(ref_f32),
                               rtol=5e-2, atol=2e-1)

    print("KERNEL_OK")
</pallas_src>

<mosaic_0001>
module attributes {stable_mosaic.version = 11 : i64} {
  func.func @_table_lookup_kernel(%arg0: i32, %arg1: memref<8x1xi32, #tpu.memory_space<vmem>>, %arg2: memref<8x128xf32, #tpu.memory_space<vmem>>, %arg3: memref<8x128xf32, #tpu.memory_space<vmem>>) attributes {dimension_semantics = [#tpu.dimension_semantics<parallel>], iteration_bounds = array<i64: 2>, scalar_prefetch = 0 : i64, scratch_operands = 0 : i64, tpu.core_type = #tpu.core_type<tc>, window_params = [{transform_indices = @transform_0, window_bounds = array<i64: 8, 1>}, {pipeline_mode = #tpu.pipeline_mode<synchronous>, transform_indices = @transform_1, window_bounds = array<i64: 8, 128>}, {transform_indices = @transform_2, window_bounds = array<i64: 8, 128>}]} {
    %c0 = arith.constant 0 : index
    %c0_0 = arith.constant 0 : index
    %0 = vector.load %arg1[%c0, %c0_0] : memref<8x1xi32, #tpu.memory_space<vmem>>, vector<8x1xi32>
    %cst = arith.constant 0.000000e+00 : f32
    %1 = vector.broadcast %cst : f32 to vector<8x128xf32>
    %c0_1 = arith.constant 0 : index
    %c0_2 = arith.constant 0 : index
    %2 = vector.load %arg2[%c0_1, %c0_2] : memref<8x128xf32, #tpu.memory_space<vmem>>, vector<1x128xf32>
    %c0_i32 = arith.constant 0 : i32
    %3 = vector.broadcast %c0_i32 : i32 to vector<8x1xi32>
    %4 = arith.cmpi eq, %0, %3 : vector<8x1xi32>
    %cst_3 = arith.constant 0.000000e+00 : f32
    %5 = vector.shape_cast %4 : vector<8x1xi1> to vector<8x1xi1>
    %6 = vector.broadcast %5 : vector<8x1xi1> to vector<8x128xi1>
    %7 = vector.shape_cast %2 : vector<1x128xf32> to vector<1x128xf32>
    %8 = vector.broadcast %7 : vector<1x128xf32> to vector<8x128xf32>
    %9 = vector.broadcast %cst_3 : f32 to vector<8x128xf32>
    %10 = arith.select %6, %8, %9 : vector<8x128xi1>, vector<8x128xf32>
    %11 = arith.addf %1, %10 : vector<8x128xf32>
    %c1 = arith.constant 1 : index
    %c0_4 = arith.constant 0 : index
    %12 = vector.load %arg2[%c1, %c0_4] : memref<8x128xf32, #tpu.memory_space<vmem>>, vector<1x128xf32>
    %c1_i32 = arith.constant 1 : i32
    %13 = vector.broadcast %c1_i32 : i32 to vector<8x1xi32>
    %14 = arith.cmpi eq, %0, %13 : vector<8x1xi32>
    %cst_5 = arith.constant 0.000000e+00 : f32
    %15 = vector.shape_cast %14 : vector<8x1xi1> to vector<8x1xi1>
    %16 = vector.broadcast %15 : vector<8x1xi1> to vector<8x128xi1>
    %17 = vector.shape_cast %12 : vector<1x128xf32> to vector<1x128xf32>
    %18 = vector.broadcast %17 : vector<1x128xf32> to vector<8x128xf32>
    %19 = vector.broadcast %cst_5 : f32 to vector<8x128xf32>
    %20 = arith.select %16, %18, %19 : vector<8x128xi1>, vector<8x128xf32>
    %21 = arith.addf %11, %20 : vector<8x128xf32>
    %c2 = arith.constant 2 : index
    %c0_6 = arith.constant 0 : index
    %22 = vector.load %arg2[%c2, %c0_6] : memref<8x128xf32, #tpu.memory_space<vmem>>, vector<1x128xf32>
    %c2_i32 = arith.constant 2 : i32
    %23 = vector.broadcast %c2_i32 : i32 to vector<8x1xi32>
    %24 = arith.cmpi eq, %0, %23 : vector<8x1xi32>
    %cst_7 = arith.constant 0.000000e+00 : f32
    %25 = vector.shape_cast %24 : vector<8x1xi1> to vector<8x1xi1>
    %26 = vector.broadcast %25 : vector<8x1xi1> to vector<8x128xi1>
    %27 = vector.shape_cast %22 : vector<1x128xf32> to vector<1x128xf32>
    %28 = vector.broadcast %27 : vector<1x128xf32> to vector<8x128xf32>
    %29 = vector.broadcast %cst_7 : f32 to vector<8x128xf32>
    %30 = arith.select %26, %28, %29 : vector<8x128xi1>, vector<8x128xf32>
    %31 = arith.addf %21, %30 : vector<8x128xf32>
    %c3 = arith.constant 3 : index
    %c0_8 = arith.constant 0 : index
    %32 = vector.load %arg2[%c3, %c0_8] : memref<8x128xf32, #tpu.memory_space<vmem>>, vector<1x128xf32>
    %c3_i32 = arith.constant 3 : i32
    %33 = vector.broadcast %c3_i32 : i32 to vector<8x1xi32>
    %34 = arith.cmpi eq, %0, %33 : vector<8x1xi32>
    %cst_9 = arith.constant 0.000000e+00 : f32
    %35 = vector.shape_cast %34 : vector<8x1xi1> to vector<8x1xi1>
    %36 = vector.broadcast %35 : vector<8x1xi1> to vector<8x128xi1>
    %37 = vector.shape_cast %32 : vector<1x128xf32> to vector<1x128xf32>
    %38 = vector.broadcast %37 : vector<1x128xf32> to vector<8x128xf32>
    %39 = vector.broadcast %cst_9 : f32 to vector<8x128xf32>
    %40 = arith.select %36, %38, %39 : vector<8x128xi1>, vector<8x128xf32>
    %41 = arith.addf %31, %40 : vector<8x128xf32>
    %c4 = arith.constant 4 : index
    %c0_10 = arith.constant 0 : index
    %42 = vector.load %arg2[%c4, %c0_10] : memref<8x128xf32, #tpu.memory_space<vmem>>, vector<1x128xf32>
    %c4_i32 = arith.constant 4 : i32
    %43 = vector.broadcast %c4_i32 : i32 to vector<8x1xi32>
    %44 = arith.cmpi eq, %0, %43 : vector<8x1xi32>
    %cst_11 = arith.constant 0.000000e+00 : f32
    %45 = vector.shape_cast %44 : vector<8x1xi1> to vector<8x1xi1>
    %46 = vector.broadcast %45 : vector<8x1xi1> to vector<8x128xi1>
    %47 = vector.shape_cast %42 : vector<1x128xf32> to vector<1x128xf32>
    %48 = vector.broadcast %47 : vector<1x128xf32> to vector<8x128xf32>
    %49 = vector.broadcast %cst_11 : f32 to vector<8x128xf32>
    %50 = arith.select %46, %48, %49 : vector<8x128xi1>, vector<8x128xf32>
    %51 = arith.addf %41, %50 : vector<8x128xf32>
    %c5 = arith.constant 5 : index
    %c0_12 = arith.constant 0 : index
    %52 = vector.load %arg2[%c5, %c0_12] : memref<8x128xf32, #tpu.memory_space<vmem>>, vector<1x128xf32>
    %c5_i32 = arith.constant 5 : i32
    %53 = vector.broadcast %c5_i32 : i32 to vector<8x1xi32>
    %54 = arith.cmpi eq, %0, %53 : vector<8x1xi32>
    %cst_13 = arith.constant 0.000000e+00 : f32
    %55 = vector.shape_cast %54 : vector<8x1xi1> to vector<8x1xi1>
    %56 = vector.broadcast %55 : vector<8x1xi1> to vector<8x128xi1>
    %57 = vector.shape_cast %52 : vector<1x128xf32> to vector<1x128xf32>
    %58 = vector.broadcast %57 : vector<1x128xf32> to vector<8x128xf32>
    %59 = vector.broadcast %cst_13 : f32 to vector<8x128xf32>
    %60 = arith.select %56, %58, %59 : vector<8x128xi1>, vector<8x128xf32>
    %61 = arith.addf %51, %60 : vector<8x128xf32>
    %c6 = arith.constant 6 : index
    %c0_14 = arith.constant 0 : index
    %62 = vector.load %arg2[%c6, %c0_14] : memref<8x128xf32, #tpu.memory_space<vmem>>, vector<1x128xf32>
    %c6_i32 = arith.constant 6 : i32
    %63 = vector.broadcast %c6_i32 : i32 to vector<8x1xi32>
    %64 = arith.cmpi eq, %0, %63 : vector<8x1xi32>
    %cst_15 = arith.constant 0.000000e+00 : f32
    %65 = vector.shape_cast %64 : vector<8x1xi1> to vector<8x1xi1>
    %66 = vector.broadcast %65 : vector<8x1xi1> to vector<8x128xi1>
    %67 = vector.shape_cast %62 : vector<1x128xf32> to vector<1x128xf32>
    %68 = vector.broadcast %67 : vector<1x128xf32> to vector<8x128xf32>
    %69 = vector.broadcast %cst_15 : f32 to vector<8x128xf32>
    %70 = arith.select %66, %68, %69 : vector<8x128xi1>, vector<8x128xf32>
    %71 = arith.addf %61, %70 : vector<8x128xf32>
    %c7 = arith.constant 7 : index
    %c0_16 = arith.constant 0 : index
    %72 = vector.load %arg2[%c7, %c0_16] : memref<8x128xf32, #tpu.memory_space<vmem>>, vector<1x128xf32>
    %c7_i32 = arith.constant 7 : i32
    %73 = vector.broadcast %c7_i32 : i32 to vector<8x1xi32>
    %74 = arith.cmpi eq, %0, %73 : vector<8x1xi32>
    %cst_17 = arith.constant 0.000000e+00 : f32
    %75 = vector.shape_cast %74 : vector<8x1xi1> to vector<8x1xi1>
    %76 = vector.broadcast %75 : vector<8x1xi1> to vector<8x128xi1>
    %77 = vector.shape_cast %72 : vector<1x128xf32> to vector<1x128xf32>
    %78 = vector.broadcast %77 : vector<1x128xf32> to vector<8x128xf32>
    %79 = vector.broadcast %cst_17 : f32 to vector<8x128xf32>
    %80 = arith.select %76, %78, %79 : vector<8x128xi1>, vector<8x128xf32>
    %81 = arith.addf %71, %80 : vector<8x128xf32>
    %c0_18 = arith.constant 0 : index
    %c0_19 = arith.constant 0 : index
    %82 = vector.load %arg3[%c0_18, %c0_19] : memref<8x128xf32, #tpu.memory_space<vmem>>, vector<8x128xf32>
    tpu.vector_store %arg3[%c0_18, %c0_19], %81 {strides = array<i32>} : memref<8x128xf32, #tpu.memory_space<vmem>>, vector<8x128xf32>,
    return
  }
  func.func @transform_0(%arg0: i32) -> (i32, i32) {
    %c0_i32 = arith.constant 0 : i32
    %c0_i32_0 = arith.constant 0 : i32
    return %arg0, %c0_i32 : i32, i32
  }
  func.func @transform_1(%arg0: i32) -> (i32, i32) {
    %c0_i32 = arith.constant 0 : i32
    %c0_i32_0 = arith.constant 0 : i32
    %c0_i32_1 = arith.constant 0 : i32
    return %c0_i32, %c0_i32_0 : i32, i32
  }
  func.func @transform_2(%arg0: i32) -> (i32, i32) {
    %c0_i32 = arith.constant 0 : i32
    %c0_i32_0 = arith.constant 0 : i32
    return %arg0, %c0_i32 : i32, i32
  }
}

</mosaic_0001>

<bundles_post_ra>
// kernel: dbn_forward_discrete.1
= control target key start
LH: loop header
LB: loop body
LE: loop exit
PB: predicated region body
PF: predicated region fallthrough
CT: control target
= control target key end

     0   :  { %s350_s9 = smov 0   ;;  %s398_s0 = inlined_call_operand.vmem [shape: s32[16,1], index: 0, kind: input, shape index: {}]   ;;  %s399_s1 = inlined_call_operand.vmem [shape: f32[8,128], index: 1, kind: input, shape index: {}]   ;;  %s400_s2 = inlined_call_operand.vmem [shape: f32[16,128], index: 2, kind: output, shape index: {}]  }
   0x1 LB: > { %s298_s10 = sadd.s32 4294967295, %s332_s9   ;;  %p302_p0 = scmp.ge.s32.totalorder %s332_s9, 1  ;;  %s332_s9 = sphi %s350_s9, %s12_s9  }
   0x2   : > { %p111_p1 = scmp.lt.s32.totalorder %s332_s9, 3 }
   0x4   : > { %p112_p2 = pnand %p302_p0, %p111_p1 }
   0x5   : > { %p131_p3 = scmp.lt.s32.totalorder (!%p112_p2), %s298_s10, 1  ;;  %v334_v0 = vmov (!%p112_p2), 0   ;;  %v305_v12 = vld [vmem:[%s399_s1] ss:$0 sm:$0xff] (!%p112_p2)  ;;  %v306_v13 = vld [vmem:[%s399_s1 + $0x1] ss:$0 sm:$0xff] (!%p112_p2) }
   0x6   : > { %115 = sbr.rel (%p112_p2) target bundleno = 168 (0xa8), region = 28  ;;  %325 = vset.pattern.permute.xlu1 (!%p112_p2), %v334_v0  ;;  %324 = vset.pattern.permute.xlu0 (!%p112_p2), %v334_v0  ;;  %v307_v16 = vld [vmem:[%s399_s1 + $0x2] ss:$0 sm:$0xff] (!%p112_p2)  ;;  %v308_v19 = vld [vmem:[%s399_s1 + $0x3] ss:$0 sm:$0xff] (!%p112_p2) }
   0x7   : > { %v309_v25 = vld [vmem:[%s399_s1 + $0x4] ss:$0 sm:$0xff] (!%p112_p2)  ;;  %v310_v27 = vld [vmem:[%s399_s1 + $0x5] ss:$0 sm:$0xff] (!%p112_p2)  ;;  %v311_v33 = vld [vmem:[%s399_s1 + $0x6] ss:$0 sm:$0xff] (!%p112_p2) }
   0x8   : > { %v312_v35 = vld [vmem:[%s399_s1 + $0x7] ss:$0 sm:$0xff] (!%p112_p2) }
   0xd   : > { %s402_s10 = smov (!%p131_p3, %s298_s10), 1 }
   0xe   : > { %s303_s11 = sshll.u32 %s402_s10, 3 }
   0xf   : > { %s134_s14 = scalar_lea.vmem %s398_s0, %s303_s11  ;;  %s138_s5 = scalar_lea.vmem %s400_s2, %s303_s11 }
  0x10   : > { %v139_v1 = vld [vmem:[%s134_s14] sm:$0xff] }
  0x11   : > { %vm167_vm0 = vcmp.eq.s32.totalorder %v139_v1, 2  ;;  %vm141_vm1 = vcmp.eq.s32.totalorder %v139_v1, 0  ;;  %vm180_vm2 = vcmp.eq.s32.totalorder %v139_v1, 3  ;;  %vm154_vm3 = vcmp.eq.s32.totalorder %v139_v1, 1 }
  0x12   : > { %v168_v2 = vsel %vm167_vm0, 1, %v334_v0  ;;  %v142_v3 = vsel %vm141_vm1, 1, %v334_v0  ;;  %v181_v4 = vsel %vm180_vm2, 1, %v334_v0  ;;  %v155_v5 = vsel %vm154_vm3, 1, %v334_v0 }
  0x13   : > { %170 = vperm.xlu1 %325, %v168_v2   ;;  %144 = vperm.xlu0 %324, %v142_v3   ;;  %vm206_vm4 = vcmp.eq.s32.totalorder %v139_v1, 5  ;;  %vm193_vm5 = vcmp.eq.s32.totalorder %v139_v1, 4  ;;  %vm232_vm6 = vcmp.eq.s32.totalorder %v139_v1, 7  ;;  %vm219_vm7 = vcmp.eq.s32.totalorder %v139_v1, 6 }
  0x14   : > { %v207_v6 = vsel %vm206_vm4, 1, %v334_v0  ;;  %v194_v7 = vsel %vm193_vm5, 1, %v334_v0  ;;  %v233_v8 = vsel %vm232_vm6, 1, %v334_v0  ;;  %v220_v9 = vsel %vm219_vm7, 1, %v334_v0 }
  0x17   : > { %183 = vperm.xlu1 %325, %v181_v4   ;;  %157 = vperm.xlu0 %324, %v155_v5  }
  0x1b   : > { %209 = vperm.xlu1 %325, %v207_v6   ;;  %196 = vperm.xlu0 %324, %v194_v7  }
  0x1f   : > { %235 = vperm.xlu1 %325, %v233_v8   ;;  %222 = vperm.xlu0 %324, %v220_v9  }
  0x92   : > { %v171_v10 = vpop.permute.xlu1 %170  ;;  %v145_v11 = vpop.permute.xlu0 %144 }
  0x93   : > { %vm146_vm8 = vcmp.eq.s32.totalorder %v145_v11, 1  ;;  %vm172_vm9 = vcmp.eq.s32.totalorder %v171_v10, 1 }
  0x94   : > { %v151_v17 = vsel %vm146_vm8, %v305_v12, 0.0  ;;  %v177_v21 = vsel %vm172_vm9, %v307_v16, 0.0 }
  0x96   : > { %v184_v14 = vpop.permute.xlu1 %183  ;;  %v158_v15 = vpop.permute.xlu0 %157 }
  0x97   : > { %vm159_vm10 = vcmp.eq.s32.totalorder %v158_v15, 1  ;;  %vm185_vm11 = vcmp.eq.s32.totalorder %v184_v14, 1 }
  0x98   : > { %v164_v18 = vsel %vm159_vm10, %v306_v13, 0.0  ;;  %v190_v26 = vsel %vm185_vm11, %v308_v19, 0.0 }
  0x99   : > { %v165_v20 = vadd.f32 %v164_v18, %v151_v17 }
  0x9a   : > { %v210_v22 = vpop.permute.xlu1 %209  ;;  %v197_v23 = vpop.permute.xlu0 %196 }
  0x9b   : > { %v178_v24 = vadd.f32 %v177_v21, %v165_v20  ;;  %vm198_vm12 = vcmp.eq.s32.totalorder %v197_v23, 1  ;;  %vm211_vm13 = vcmp.eq.s32.totalorder %v210_v22, 1 }
  0x9c   : > { %v203_v29 = vsel %vm198_vm12, %v309_v25, 0.0  ;;  %v216_v34 = vsel %vm211_vm13, %v310_v27, 0.0 }
  0x9d   : > { %v191_v28 = vadd.f32 %v190_v26, %v178_v24 }
  0x9e   : > { %v236_v30 = vpop.permute.xlu1 %235  ;;  %v223_v31 = vpop.permute.xlu0 %222 }
  0x9f   : > { %v204_v32 = vadd.f32 %v203_v29, %v191_v28  ;;  %vm224_vm14 = vcmp.eq.s32.totalorder %v223_v31, 1  ;;  %vm237_vm15 = vcmp.eq.s32.totalorder %v236_v30, 1 }
  0xa0   : > { %v229_v37 = vsel %vm224_vm14, %v311_v33, 0.0  ;;  %v242_v39 = vsel %vm237_vm15, %v312_v35, 0.0 }
  0xa1   : > { %v217_v36 = vadd.f32 %v216_v34, %v204_v32 }
  0xa3   : > { %v230_v38 = vadd.f32 %v229_v37, %v217_v36 }
  0xa5   : > { %v243_v40 = vadd.f32 %v242_v39, %v230_v38 }
  0xa7   : > { %244 = vst [vmem:[%s138_s5] sm:$0xff] %v243_v40 }
  0xa8 PF: > { %s12_s9 = sadd.s32 1, %s332_s9  }
  0xa9   : > { %p9_p4 = scmp.ge.s32.totalorder %s12_s9, 4  }
  0xab   :  { %11 = sbr.rel (!%p9_p4) target bundleno = 1 (0x1), region = 58 }

</bundles_post_ra>
